<compile_context>
chip_gen: v7x
topology: tpu7x:2x2x1
jax: 0.10.0
libtpu: 0.0.40
codegen_flags: <defaults>
</compile_context>

<pallas_src>
import jax
import jax.numpy as jnp
from jax.experimental import pallas as pl
from jax.experimental.pallas import tpu as pltpu

C = 64        # channels
R = 4
IC = C // R   # inter_channels = 16
K = 2         # classes from object_pred
BN_EPS = 1e-5
SCALE = float(IC) ** -0.5


# ----------------------------------------------------------------------------
# VMEM / tile sizing helpers (generation-aware, with safe fallbacks)
# ----------------------------------------------------------------------------
def _tpu_vmem_capacity():
    try:
        return int(pltpu.get_tpu_info().vmem_capacity_bytes)
    except Exception:
        return 64 << 20            # conservative (v7x per-TC physical VMEM)


def _vmem_limit_bytes(needed):
    cap = _tpu_vmem_capacity()
    return int(min(max(int(needed), 32 << 20), int(cap * 0.85)))


def _default_max_tile():
    # bigger spatial tiles on 128 MiB-VMEM chips (v5e/v6e), smaller on v7x
    return 8192 if _tpu_vmem_capacity() >= (96 << 20) else 4096


def _pick_tile(hw, max_tile=None):
    if max_tile is None:
        max_tile = _default_max_tile()
    if hw <= max_tile:
        return hw
    for t in range(max_tile - max_tile % 128, 127, -128):
        if hw % t == 0:
            return t
    # TODO(synk): pad HW / masked last tile when HW has no lane-dense divisor.
    return hw


# ----------------------------------------------------------------------------
# Phase 1: per-batch object context (object_pred -> online CSS softmax ->
#          key/value/out projections), HW-tiled with scratch accumulators.
# ----------------------------------------------------------------------------
def _context_kernel(x_ref, w1_ref, b1_ref, o_ref, m_sc, l_sc, acc_sc):
    t = pl.program_id(1)

    @pl.when(t == 0)
    def _():
        m_sc[...] = jnp.full_like(m_sc, -jnp.inf)
        l_sc[...] = jnp.zeros_like(l_sc)
        acc_sc[...] = jnp.zeros_like(acc_sc)

    x = x_ref[...]                                          # (C, T) f32
    wp = w1_ref[0:K, :].astype(jnp.bfloat16)                # (K, C)
    bp = b1_ref[0:K, :]                                     # (K, 1)

    # object_pred: 1x1 conv (+bias) + ReLU -> (K, T), lane-dense
    pred = jnp.maximum(
        jnp.dot(wp, x.astype(jnp.bfloat16),
                preferred_element_type=jnp.float32) + bp, 0.0)

    # online (flash-style) spatial softmax + weighted feature accumulation
    m_prev = m_sc[...]                                      # (K, 1)
    m_new = jnp.maximum(m_prev, jnp.max(pred, axis=1, keepdims=True))
    alpha = jnp.exp(m_prev - m_new)                         # (K, 1)
    p = jnp.exp(pred - m_new)                               # (K, T)

    l_sc[...] = alpha * l_sc[...] + jnp.sum(p, axis=1, keepdims=True)
    m_sc[...] = m_new

    s0 = jnp.sum(x * p[0:1, :], axis=1, keepdims=True)      # (C, 1) f32 exact
    s1 = jnp.sum(x * p[1:2, :], axis=1, keepdims=True)
    acc_sc[...] = jnp.concatenate(
        [acc_sc[:, 0:1] * alpha[0:1, 0:1] + s0,
         acc_sc[:, 1:2] * alpha[1:2, 0:1] + s1], axis=1)     # (C, 2)

    @pl.when(t == pl.num_programs(1) - 1)
    def _():
        # CSS context: exact normalization (per-class scalars)
        ctx = jnp.concatenate(
            [acc_sc[:, 0:1] / l_sc[0:1, 0:1],
             acc_sc[:, 1:2] / l_sc[1:2, 0:1]], axis=1)       # (C, 2) f32

        # unpack context-path weight slab (f32, tiny matmuls)
        wk1 = w1_ref[8:8 + IC, 0:C]                          # (IC, C)
        wk2 = w1_ref[24:24 + IC, 0:IC]                       # (IC, IC)
        wv = w1_ref[40:40 + IC, 0:C]                         # (IC, C)
        wo = w1_ref[56:56 + C, 0:IC]                         # (C, IC)
        bk1 = b1_ref[8:8 + IC, :]
        bk2 = b1_ref[24:24 + IC, :]
        bv = b1_ref[40:40 + IC, :]
        bo = b1_ref[56:56 + C, :]

        k1 = jnp.maximum(
            jnp.dot(wk1, ctx, preferred_element_type=jnp.float32) + bk1, 0.0)
        key = jnp.maximum(
            jnp.dot(wk2, k1, preferred_element_type=jnp.float32) + bk2, 0.0)
        val = jnp.maximum(
            jnp.dot(wv, ctx, preferred_element_type=jnp.float32) + bv, 0.0)

        # fold the K=2 attention into per-batch vectors:
        #   sim0 - sim1 = IC^-0.5 * q . (key0 - key1)        -> kd
        #   wo @ (att0*v0 + att1*v1) + bo = vb + att0 * vd    -> vd, vb
        kd = (key[:, 0:1] - key[:, 1:2]) * SCALE             # (IC, 1)
        vo = jnp.dot(wo, val, preferred_element_type=jnp.float32)   # (C, 2)
        vd = vo[:, 0:1] - vo[:, 1:2]
        vb = vo[:, 1:2] + bo

        kd_pad = jnp.concatenate(
            [kd, jnp.zeros((C - IC, 1), jnp.float32)], axis=0)       # (C, 1)
        o_ref[...] = jnp.concatenate([kd_pad, vd, vb], axis=1)       # (C, 3)


# ----------------------------------------------------------------------------
# Phase 2: spatially tiled POC, concat-free, stacked-weight MXU passes
# ----------------------------------------------------------------------------
def _poc_kernel(im_ref, fw_ref, ctx_ref, w2_ref, b2_ref, o_ref):
    # packed per-pixel weights (bf16) and biases (f32)
    w_stk = w2_ref[0:IC + C, :]                  # (80, C): [wq1^T ; wb_x^T]
    wq2 = w2_ref[IC + C:IC + C + IC, 0:IC]       # (IC, IC)
    wbc = w2_ref[IC + C + IC:2 * (IC + C), :]    # (C, C):  wb_ctx^T
    bq1 = b2_ref[0:IC, :]
    bq2 = b2_ref[IC:2 * IC, :]
    bb = b2_ref[2 * IC:2 * IC + C, :]

    kd = ctx_ref[0:IC, 0:1]                      # (IC, 1) f32 (IC^-0.5 folded)
    vd = ctx_ref[:, 1:2]                         # (C, 1)
    vb = ctx_ref[:, 2:3]                         # (C, 1)  (out-proj bias folded)

    def poc(x_f32):
        x = x_f32.astype(jnp.bfloat16)                                   # (C, T)
        # one MXU pass over x yields both q1 (wq1@x) and the bottleneck's wb_x@x
        y = jnp.dot(w_stk, x, preferred_element_type=jnp.float32)        # (80, T)
        q1 = jnp.maximum(y[0:IC, :] + bq1, 0.0)
        xb = y[IC:IC + C, :]                                             # (C, T)
        q = jnp.maximum(
            jnp.dot(wq2, q1.astype(jnp.bfloat16),
                    preferred_element_type=jnp.float32) + bq2, 0.0)      # (IC, T)

        # 2-way attention softmax == sigmoid of the score difference (exact)
        d = jnp.sum(q * kd, axis=0, keepdims=True)                       # (1, T)
        a0 = 1.0 / (1.0 + jnp.exp(-d))

        # out_project collapses to a broadcast FMA + ReLU
        out = jnp.maximum(vd * a0 + vb, 0.0)                             # (C, T)

        # bottleneck, concat-free: wb_ctx@out + wb_x@x + bb
        z = jnp.dot(wbc, out.astype(jnp.bfloat16),
                    preferred_element_type=jnp.float32) + xb + bb
        return jnp.maximum(z, 0.0)

    # foc = poc(im) + poc(fw)
    o_ref[...] = (poc(im_ref[...]) + poc(fw_ref[...])).astype(o_ref.dtype)


# ----------------------------------------------------------------------------
# Wrapper: weight packing + pallas_calls (no NCHW transposes, only reshapes)
# ----------------------------------------------------------------------------
def fam_forward(im_nchw, fw_nchw, params, *, tile_hw=None, out_dtype=jnp.float32):
    B, Cc, H, W = im_nchw.shape
    assert Cc == C
    HW = H * W
    if tile_hw is None:
        tile_hw = _pick_tile(HW)
    assert HW % tile_hw == 0
    assert tile_hw == HW or tile_hw % 128 == 0, "HW tiles must be lane-dense"
    nt = HW // tile_hw

    f32, bf16 = jnp.float32, jnp.bfloat16
    # channels-first, f32 straight from HBM (no separate astype pass; kernels
    # cast to bf16 in VMEM where the MXU needs it)
    im = im_nchw.reshape(B, C, HW).astype(f32)
    fw = fw_nchw.reshape(B, C, HW).astype(f32)

    # -- packed weight slabs (pre-transposed for channels-first matmuls) -----
    w1 = jnp.zeros((120, C), f32)                  # context path (f32)
    w1 = w1.at[0:K, 0:C].set(params["wp"].T)
    w1 = w1.at[8:8 + IC, 0:C].set(params["wk1"].T)
    w1 = w1.at[24:24 + IC, 0:IC].set(params["wk2"].T)
    w1 = w1.at[40:40 + IC, 0:C].set(params["wv"].T)
    w1 = w1.at[56:56 + C, 0:IC].set(params["wo"].T)

    b1 = jnp.zeros((120, 1), f32)
    b1 = b1.at[0:K, 0].set(params["bp"])
    b1 = b1.at[8:8 + IC, 0].set(params["bk1"])
    b1 = b1.at[24:24 + IC, 0].set(params["bk2"])
    b1 = b1.at[40:40 + IC, 0].set(params["bv"])
    b1 = b1.at[56:56 + C, 0].set(params["bo"])

    # per-pixel weights: [wq1^T ; wb_x^T ; wq2^T ; wb_ctx^T]  (bf16)
    wb_ctx, wb_x = params["wb"][0:C, :], params["wb"][C:2 * C, :]
    w2 = jnp.zeros((2 * (IC + C), C), f32)
    w2 = w2.at[0:IC, 0:C].set(params["wq1"].T)
    w2 = w2.at[IC:IC + C, 0:C].set(wb_x.T)
    w2 = w2.at[IC + C:IC + C + IC, 0:IC].set(params["wq2"].T)
    w2 = w2.at[IC + C + IC:2 * (IC + C), 0:C].set(wb_ctx.T)
    w2 = w2.astype(bf16)

    b2 = jnp.zeros((2 * IC + C, 1), f32)
    b2 = b2.at[0:IC, 0].set(params["bq1"])
    b2 = b2.at[IC:2 * IC, 0].set(params["bq2"])
    b2 = b2.at[2 * IC:2 * IC + C, 0].set(params["bb"])

    out_bytes = jnp.dtype(out_dtype).itemsize

    # -- phase 1: per-batch object context (HW-tiled online softmax) ---------
    vmem_p1 = _vmem_limit_bytes(
        2 * 4 * C * tile_hw + 24 * C * tile_hw + (8 << 20))
    cost_p1 = pl.CostEstimate(
        flops=int(4 * B * HW * K * C),
        transcendentals=int(B * HW * K),
        bytes_accessed=int(4 * B * C * HW + 4 * (w1.size + b1.size) + 12 * B * C))
    ctx_pack = pl.pallas_call(
        _context_kernel,
        out_shape=jax.ShapeDtypeStruct((B, C, 3), f32),
        grid=(B, nt),
        in_specs=[
            pl.BlockSpec((None, C, tile_hw), lambda b, t: (b, 0, t)),
            pl.BlockSpec((120, C), lambda b, t: (0, 0)),
            pl.BlockSpec((120, 1), lambda b, t: (0, 0)),
        ],
        out_specs=pl.BlockSpec((None, C, 3), lambda b, t: (b, 0, 0)),
        scratch_shapes=[pltpu.VMEM((K, 1), f32),       # running max
                        pltpu.VMEM((K, 1), f32),       # running sum-exp
                        pltpu.VMEM((C, K), f32)],      # running weighted feats
        compiler_params=pltpu.CompilerParams(
            dimension_semantics=("parallel", "arbitrary"),
            vmem_limit_bytes=vmem_p1),
        cost_estimate=cost_p1,
    )(im, w1, b1)

    # -- phase 2: spatially tiled POC, flat (B*nt) parallel grid --------------
    vmem_p2 = _vmem_limit_bytes(
        2 * (8 + out_bytes) * C * tile_hw + 40 * C * tile_hw + (8 << 20))
    cost_p2 = pl.CostEstimate(
        flops=int(4 * B * HW * ((IC + C) * C + IC * IC + C * C)),
        transcendentals=int(2 * B * HW),
        bytes_accessed=int(B * C * HW * (8 + out_bytes)
                           + 2 * w2.size + 4 * b2.size + 12 * B * C))
    out = pl.pallas_call(
        _poc_kernel,
        out_shape=jax.ShapeDtypeStruct((B, C, HW), out_dtype),
        grid=(B * nt,),
        in_specs=[
            pl.BlockSpec((None, C, tile_hw), lambda i: (i // nt, 0, i % nt)),
            pl.BlockSpec((None, C, tile_hw), lambda i: (i // nt, 0, i % nt)),
            pl.BlockSpec((None, C, 3), lambda i: (i // nt, 0, 0)),
            pl.BlockSpec((2 * (IC + C), C), lambda i: (0, 0)),
            pl.BlockSpec((2 * IC + C, 1), lambda i: (0, 0)),
        ],
        out_specs=pl.BlockSpec((None, C, tile_hw), lambda i: (i // nt, 0, i % nt)),
        compiler_params=pltpu.CompilerParams(
            dimension_semantics=("parallel",),
            vmem_limit_bytes=vmem_p2),
        cost_estimate=cost_p2,
    )(im, fw, ctx_pack, w2, b2)

    return out.reshape(B, C, H, W)


# ----------------------------------------------------------------------------
# Deterministic synthetic parameters (BN folded into the 1x1 convs)
# ----------------------------------------------------------------------------
def _fold_bn(w, gamma, beta, mean, var):
    s = gamma / jnp.sqrt(var + BN_EPS)
    return w * s[None, :], beta - mean * s


def make_params(rng):
    keys = iter(jax.random.split(rng, 40))

    def w(shape, scale=0.1):
        return scale * jax.random.normal(next(keys), shape, jnp.float32)

    def bn(c):
        g = 1.0 + 0.1 * jax.random.normal(next(keys), (c,), jnp.float32)
        b = 0.1 * jax.random.normal(next(keys), (c,), jnp.float32)
        mu = 0.1 * jax.random.normal(next(keys), (c,), jnp.float32)
        var = 0.5 + jax.random.uniform(next(keys), (c,), jnp.float32)
        return g, b, mu, var

    p = {}
    p["wp"] = w((C, K))                                   # object_pred (bias, no BN)
    p["bp"] = 0.05 * jax.random.normal(next(keys), (K,), jnp.float32)
    p["wq1"], p["bq1"] = _fold_bn(w((C, IC)), *bn(IC))    # query_project conv1
    p["wq2"], p["bq2"] = _fold_bn(w((IC, IC)), *bn(IC))   # query_project conv2
    p["wk1"], p["bk1"] = _fold_bn(w((C, IC)), *bn(IC))    # key_project conv1
    p["wk2"], p["bk2"] = _fold_bn(w((IC, IC)), *bn(IC))   # key_project conv2
    p["wv"], p["bv"] = _fold_bn(w((C, IC)), *bn(IC))      # value_project
    p["wo"], p["bo"] = _fold_bn(w((IC, C)), *bn(C))       # out_project
    p["wb"], p["bb"] = _fold_bn(w((2 * C, C)), *bn(C))    # bottleneck
    return p


# ----------------------------------------------------------------------------
# Pure-JAX reference (original module math, same bf16 quantization points)
# ----------------------------------------------------------------------------
def fam_reference(im_nchw, fw_nchw, p):
    B, _, H, W = im_nchw.shape
    HW = H * W
    bf16 = jnp.bfloat16
    with jax.default_matmul_precision("highest"):
        im = jnp.transpose(im_nchw, (0, 2, 3, 1)).reshape(B, HW, C)      # f32
        fw = jnp.transpose(fw_nchw, (0, 2, 3, 1)).reshape(B, HW, C)

        pred = jax.nn.relu(
            jnp.dot(im.astype(bf16), p["wp"].astype(bf16),
                    preferred_element_type=jnp.float32) + p["bp"])
        probs = jax.nn.softmax(pred, axis=1)                 # softmax over HW
        ctx = jnp.einsum("bhk,bhc->bkc", probs, im)          # (B, K, C) f32

        k1 = jax.nn.relu(ctx @ p["wk1"] + p["bk1"])
        key = jax.nn.relu(k1 @ p["wk2"] + p["bk2"])          # (B, K, IC)
        val = jax.nn.relu(ctx @ p["wv"] + p["bv"])           # (B, K, IC)

        wq1 = p["wq1"].astype(bf16)
        wq2 = p["wq2"].astype(bf16)
        wb = p["wb"].astype(bf16)

        def poc(x):
            xb = x.astype(bf16)
            q1 = jax.nn.relu(
                jnp.dot(xb, wq1, preferred_element_type=jnp.float32) + p["bq1"])
            q = jax.nn.relu(
                jnp.dot(q1.astype(bf16), wq2,
                        preferred_element_type=jnp.float32) + p["bq2"])
            sim = jnp.einsum("bhi,bki->bhk", q, key) * SCALE
            att = jax.nn.softmax(sim, axis=-1)
            cxt = jnp.einsum("bhk,bki->bhi", att, val)
            out = jax.nn.relu(cxt @ p["wo"] + p["bo"])
            cat = jnp.concatenate([out.astype(bf16), xb], axis=-1)
            z = jnp.dot(cat, wb, preferred_element_type=jnp.float32) + p["bb"]
            return jax.nn.relu(z)

        foc = poc(im) + poc(fw)
    return jnp.transpose(foc.reshape(B, H, W, C), (0, 3, 1, 2))


if __name__ == "__main__":
    root = jax.random.PRNGKey(0)
    k_im, k_fw, k_par = jax.random.split(root, 3)

    B, H, W = 2, 16, 16
    im = jax.random.normal(k_im, (B, C, H, W), jnp.float32)
    fw = jax.random.normal(k_fw, (B, C, H, W), jnp.float32)
    params = make_params(k_par)

    # tile_hw=128 forces multi-step grids (exercises the online-softmax carry)
    out = jax.block_until_ready(fam_forward(im, fw, params, tile_hw=128))
    ref = jax.block_until_ready(fam_reference(im, fw, params))

    assert out.shape == (B, C, H, W)
    err = float(jnp.max(jnp.abs(out - ref)))
    assert err < 2e-2, f"max abs err {err}"
    print("KERNEL_OK")
</pallas_src>

<mosaic_0001>
module attributes {stable_mosaic.version = 11 : i64} {
  func.func @_context_kernel(%arg0: i32, %arg1: i32, %arg2: memref<1x64x128xf32, #tpu.memory_space<vmem>>, %arg3: memref<120x64xf32, #tpu.memory_space<vmem>>, %arg4: memref<120x1xf32, #tpu.memory_space<vmem>>, %arg5: memref<1x64x3xf32, #tpu.memory_space<vmem>>, %arg6: memref<2x1xf32, #tpu.memory_space<vmem>>, %arg7: memref<2x1xf32, #tpu.memory_space<vmem>>, %arg8: memref<64x2xf32, #tpu.memory_space<vmem>>) attributes {dimension_semantics = [#tpu.dimension_semantics<parallel>, #tpu.dimension_semantics<arbitrary>], iteration_bounds = array<i64: 2, 2>, scalar_prefetch = 0 : i64, scratch_operands = 3 : i64, tpu.core_type = #tpu.core_type<tc>, window_params = [{transform_indices = @transform_0, window_bounds = array<i64: 1, 64, 128>}, {pipeline_mode = #tpu.pipeline_mode<synchronous>, transform_indices = @transform_1, window_bounds = array<i64: 120, 64>}, {pipeline_mode = #tpu.pipeline_mode<synchronous>, transform_indices = @transform_2, window_bounds = array<i64: 120, 1>}, {transform_indices = @transform_3, window_bounds = array<i64: 1, 64, 3>}]} {
    %c0_i32 = arith.constant 0 : i32
    %0 = arith.cmpi eq, %arg1, %c0_i32 : i32
    %1 = arith.extui %0 : i1 to i32
    %c0_i32_0 = arith.constant 0 : i32
    %2 = arith.cmpi ne, %1, %c0_i32_0 : i32
    scf.if %2 {
      %cst_26 = arith.constant 0xFF800000 : f32
      %55 = vector.broadcast %cst_26 : f32 to vector<2x1xf32>
      %c0_27 = arith.constant 0 : index
      %c0_28 = arith.constant 0 : index
      %56 = vector.load %arg6[%c0_27, %c0_28] : memref<2x1xf32, #tpu.memory_space<vmem>>, vector<2x1xf32>
      tpu.vector_store %arg6[%c0_27, %c0_28], %55 {strides = array<i32>} : memref<2x1xf32, #tpu.memory_space<vmem>>, vector<2x1xf32>,
      %cst_29 = arith.constant 0.000000e+00 : f32
      %57 = vector.broadcast %cst_29 : f32 to vector<2x1xf32>
      %c0_30 = arith.constant 0 : index
      %c0_31 = arith.constant 0 : index
      %58 = vector.load %arg7[%c0_30, %c0_31] : memref<2x1xf32, #tpu.memory_space<vmem>>, vector<2x1xf32>
      tpu.vector_store %arg7[%c0_30, %c0_31], %57 {strides = array<i32>} : memref<2x1xf32, #tpu.memory_space<vmem>>, vector<2x1xf32>,
      %cst_32 = arith.constant 0.000000e+00 : f32
      %59 = vector.broadcast %cst_32 : f32 to vector<64x2xf32>
      %c0_33 = arith.constant 0 : index
      %c0_34 = arith.constant 0 : index
      %60 = vector.load %arg8[%c0_33, %c0_34] : memref<64x2xf32, #tpu.memory_space<vmem>>, vector<64x2xf32>
      tpu.vector_store %arg8[%c0_33, %c0_34], %59 {strides = array<i32>} : memref<64x2xf32, #tpu.memory_space<vmem>>, vector<64x2xf32>,
    } else {
    }
    %c0 = arith.constant 0 : index
    %c0_1 = arith.constant 0 : index
    %c0_2 = arith.constant 0 : index
    %3 = vector.load %arg2[%c0, %c0_1, %c0_2] : memref<1x64x128xf32, #tpu.memory_space<vmem>>, vector<1x64x128xf32>
    %4 = vector.shape_cast %3 : vector<1x64x128xf32> to vector<64x128xf32>
    %c0_3 = arith.constant 0 : index
    %c0_4 = arith.constant 0 : index
    %5 = vector.load %arg3[%c0_3, %c0_4] : memref<120x64xf32, #tpu.memory_space<vmem>>, vector<2x64xf32>
    %6 = arith.truncf %5 : vector<2x64xf32> to vector<2x64xbf16>
    %c0_5 = arith.constant 0 : index
    %c0_6 = arith.constant 0 : index
    %7 = vector.load %arg4[%c0_5, %c0_6] : memref<120x1xf32, #tpu.memory_space<vmem>>, vector<2x1xf32>
    %8 = arith.truncf %4 : vector<64x128xf32> to vector<64x128xbf16>
    %cst = arith.constant dense<0.000000e+00> : vector<2x128xf32>
    %9 = tpu.matmul %6, %8, %cst {dimension_numbers = #tpu.dot_dimension_numbers<[1], [0], [0], [1], [0, 0, 1, 1], [], []>} : vector<2x64xbf16>, vector<64x128xbf16>, vector<2x128xf32> -> vector<2x128xf32>
    %10 = vector.broadcast %7 : vector<2x1xf32> to vector<2x128xf32>
    %11 = arith.addf %9, %10 : vector<2x128xf32>
    %cst_7 = arith.constant 0.000000e+00 : f32
    %12 = vector.broadcast %cst_7 : f32 to vector<2x128xf32>
    %13 = arith.maximumf %11, %12 : vector<2x128xf32>
    %c0_8 = arith.constant 0 : index
    %c0_9 = arith.constant 0 : index
    %14 = vector.load %arg6[%c0_8, %c0_9] : memref<2x1xf32, #tpu.memory_space<vmem>>, vector<2x1xf32>
    %cst_10 = arith.constant dense<0xFF800000> : vector<2xf32>
    %15 = vector.multi_reduction <maximumf>, %13, %cst_10 [1] : vector<2x128xf32> to vector<2xf32>
    %16 = vector.shape_cast %15 : vector<2xf32> to vector<2x1xf32>
    %17 = arith.maximumf %14, %16 : vector<2x1xf32>
    %18 = arith.subf %14, %17 : vector<2x1xf32>
    %19 = math.exp %18 : vector<2x1xf32>
    %20 = vector.broadcast %17 : vector<2x1xf32> to vector<2x128xf32>
    %21 = arith.subf %13, %20 : vector<2x128xf32>
    %22 = math.exp %21 : vector<2x128xf32>
    %c0_11 = arith.constant 0 : index
    %c0_12 = arith.constant 0 : index
    %23 = vector.load %arg7[%c0_11, %c0_12] : memref<2x1xf32, #tpu.memory_space<vmem>>, vector<2x1xf32>
    %24 = arith.mulf %19, %23 : vector<2x1xf32>
    %cst_13 = arith.constant dense<0.000000e+00> : vector<2xf32>
    %25 = vector.multi_reduction <add>, %22, %cst_13 [1] : vector<2x128xf32> to vector<2xf32>
    %26 = vector.shape_cast %25 : vector<2xf32> to vector<2x1xf32>
    %27 = arith.addf %24, %26 : vector<2x1xf32>
    %c0_14 = arith.constant 0 : index
    %c0_15 = arith.constant 0 : index
    %28 = vector.load %arg7[%c0_14, %c0_15] : memref<2x1xf32, #tpu.memory_space<vmem>>, vector<2x1xf32>
    tpu.vector_store %arg7[%c0_14, %c0_15], %27 {strides = array<i32>} : memref<2x1xf32, #tpu.memory_space<vmem>>, vector<2x1xf32>,
    %c0_16 = arith.constant 0 : index
    %c0_17 = arith.constant 0 : index
    %29 = vector.load %arg6[%c0_16, %c0_17] : memref<2x1xf32, #tpu.memory_space<vmem>>, vector<2x1xf32>
    tpu.vector_store %arg6[%c0_16, %c0_17], %17 {strides = array<i32>} : memref<2x1xf32, #tpu.memory_space<vmem>>, vector<2x1xf32>,
    %30 = vector.extract_strided_slice %22 {offsets = [0, 0], sizes = [1, 128], strides = [1, 1]} : vector<2x128xf32> to vector<1x128xf32>
    %31 = vector.broadcast %30 : vector<1x128xf32> to vector<64x128xf32>
    %32 = arith.mulf %4, %31 : vector<64x128xf32>
    %cst_18 = arith.constant dense<0.000000e+00> : vector<64xf32>
    %33 = vector.multi_reduction <add>, %32, %cst_18 [1] : vector<64x128xf32> to vector<64xf32>
    %34 = vector.shape_cast %33 : vector<64xf32> to vector<64x1xf32>
    %35 = vector.extract_strided_slice %22 {offsets = [1, 0], sizes = [1, 128], strides = [1, 1]} : vector<2x128xf32> to vector<1x128xf32>
    %36 = vector.broadcast %35 : vector<1x128xf32> to vector<64x128xf32>
    %37 = arith.mulf %4, %36 : vector<64x128xf32>
    %cst_19 = arith.constant dense<0.000000e+00> : vector<64xf32>
    %38 = vector.multi_reduction <add>, %37, %cst_19 [1] : vector<64x128xf32> to vector<64xf32>
    %39 = vector.shape_cast %38 : vector<64xf32> to vector<64x1xf32>
    %c0_20 = arith.constant 0 : index
    %c0_21 = arith.constant 0 : index
    %40 = vector.load %arg8[%c0_20, %c0_21] : memref<64x2xf32, #tpu.memory_space<vmem>>, vector<64x1xf32>
    %41 = vector.extract_strided_slice %19 {offsets = [0, 0], sizes = [1, 1], strides = [1, 1]} : vector<2x1xf32> to vector<1x1xf32>
    %42 = vector.broadcast %41 : vector<1x1xf32> to vector<64x1xf32>
    %43 = arith.mulf %40, %42 : vector<64x1xf32>
    %44 = arith.addf %43, %34 : vector<64x1xf32>
    %c0_22 = arith.constant 0 : index
    %c1 = arith.constant 1 : index
    %45 = vector.load %arg8[%c0_22, %c1] : memref<64x2xf32, #tpu.memory_space<vmem>>, vector<64x1xf32>
    %46 = vector.extract_strided_slice %19 {offsets = [1, 0], sizes = [1, 1], strides = [1, 1]} : vector<2x1xf32> to vector<1x1xf32>
    %47 = vector.broadcast %46 : vector<1x1xf32> to vector<64x1xf32>
    %48 = arith.mulf %45, %47 : vector<64x1xf32>
    %49 = arith.addf %48, %39 : vector<64x1xf32>
    %50 = tpu.concatenate %44, %49 in 1 : vector<64x1xf32>, vector<64x1xf32> -> vector<64x2xf32>
    %c0_23 = arith.constant 0 : index
    %c0_24 = arith.constant 0 : index
    %51 = vector.load %arg8[%c0_23, %c0_24] : memref<64x2xf32, #tpu.memory_space<vmem>>, vector<64x2xf32>
    tpu.vector_store %arg8[%c0_23, %c0_24], %50 {strides = array<i32>} : memref<64x2xf32, #tpu.memory_space<vmem>>, vector<64x2xf32>,
    %c1_i32 = arith.constant 1 : i32
    %52 = arith.cmpi eq, %arg1, %c1_i32 : i32
    %53 = arith.extui %52 : i1 to i32
    %c0_i32_25 = arith.constant 0 : i32
    %54 = arith.cmpi ne, %53, %c0_i32_25 : i32
    scf.if %54 {
      %c0_26 = arith.constant 0 : index
      %c0_27 = arith.constant 0 : index
      %55 = vector.load %arg8[%c0_26, %c0_27] : memref<64x2xf32, #tpu.memory_space<vmem>>, vector<64x1xf32>
      %c0_28 = arith.constant 0 : index
      %c0_29 = arith.constant 0 : index
      %56 = vector.load %arg7[%c0_28, %c0_29] : memref<2x1xf32, #tpu.memory_space<vmem>>, vector<1x1xf32>
      %57 = vector.broadcast %56 : vector<1x1xf32> to vector<64x1xf32>
      %58 = arith.divf %55, %57 : vector<64x1xf32>
      %c0_30 = arith.constant 0 : index
      %c1_31 = arith.constant 1 : index
      %59 = vector.load %arg8[%c0_30, %c1_31] : memref<64x2xf32, #tpu.memory_space<vmem>>, vector<64x1xf32>
      %c1_32 = arith.constant 1 : index
      %c0_33 = arith.constant 0 : index
      %60 = vector.load %arg7[%c1_32, %c0_33] : memref<2x1xf32, #tpu.memory_space<vmem>>, vector<1x1xf32>
      %61 = vector.broadcast %60 : vector<1x1xf32> to vector<64x1xf32>
      %62 = arith.divf %59, %61 : vector<64x1xf32>
      %63 = tpu.concatenate %58, %62 in 1 : vector<64x1xf32>, vector<64x1xf32> -> vector<64x2xf32>
      %c8 = arith.constant 8 : index
      %c0_34 = arith.constant 0 : index
      %64 = vector.load %arg3[%c8, %c0_34] : memref<120x64xf32, #tpu.memory_space<vmem>>, vector<16x64xf32>
      %c24 = arith.constant 24 : index
      %c0_35 = arith.constant 0 : index
      %65 = vector.load %arg3[%c24, %c0_35] : memref<120x64xf32, #tpu.memory_space<vmem>>, vector<16x16xf32>
      %c40 = arith.constant 40 : index
      %c0_36 = arith.constant 0 : index
      %66 = vector.load %arg3[%c40, %c0_36] : memref<120x64xf32, #tpu.memory_space<vmem>>, vector<16x64xf32>
      %c56 = arith.constant 56 : index
      %c0_37 = arith.constant 0 : index
      %67 = vector.load %arg3[%c56, %c0_37] : memref<120x64xf32, #tpu.memory_space<vmem>>, vector<64x16xf32>
      %c8_38 = arith.constant 8 : index
      %c0_39 = arith.constant 0 : index
      %68 = vector.load %arg4[%c8_38, %c0_39] : memref<120x1xf32, #tpu.memory_space<vmem>>, vector<16x1xf32>
      %c24_40 = arith.constant 24 : index
      %c0_41 = arith.constant 0 : index
      %69 = vector.load %arg4[%c24_40, %c0_41] : memref<120x1xf32, #tpu.memory_space<vmem>>, vector<16x1xf32>
      %c40_42 = arith.constant 40 : index
      %c0_43 = arith.constant 0 : index
      %70 = vector.load %arg4[%c40_42, %c0_43] : memref<120x1xf32, #tpu.memory_space<vmem>>, vector<16x1xf32>
      %c56_44 = arith.constant 56 : index
      %c0_45 = arith.constant 0 : index
      %71 = vector.load %arg4[%c56_44, %c0_45] : memref<120x1xf32, #tpu.memory_space<vmem>>, vector<64x1xf32>
      %cst_46 = arith.constant dense<0.000000e+00> : vector<16x2xf32>
      %72 = tpu.matmul %64, %63, %cst_46 {dimension_numbers = #tpu.dot_dimension_numbers<[1], [0], [0], [1], [0, 0, 1, 1], [], []>} : vector<16x64xf32>, vector<64x2xf32>, vector<16x2xf32> -> vector<16x2xf32>
      %73 = vector.broadcast %68 : vector<16x1xf32> to vector<16x2xf32>
      %74 = arith.addf %72, %73 : vector<16x2xf32>
      %cst_47 = arith.constant 0.000000e+00 : f32
      %75 = vector.broadcast %cst_47 : f32 to vector<16x2xf32>
      %76 = arith.maximumf %74, %75 : vector<16x2xf32>
      %cst_48 = arith.constant dense<0.000000e+00> : vector<16x2xf32>
      %77 = tpu.matmul %65, %76, %cst_48 {dimension_numbers = #tpu.dot_dimension_numbers<[1], [0], [0], [1], [0, 0, 1, 1], [], []>} : vector<16x16xf32>, vector<16x2xf32>, vector<16x2xf32> -> vector<16x2xf32>
      %78 = vector.broadcast %69 : vector<16x1xf32> to vector<16x2xf32>
      %79 = arith.addf %77, %78 : vector<16x2xf32>
      %cst_49 = arith.constant 0.000000e+00 : f32
      %80 = vector.broadcast %cst_49 : f32 to vector<16x2xf32>
      %81 = arith.maximumf %79, %80 : vector<16x2xf32>
      %cst_50 = arith.constant dense<0.000000e+00> : vector<16x2xf32>
      %82 = tpu.matmul %66, %63, %cst_50 {dimension_numbers = #tpu.dot_dimension_numbers<[1], [0], [0], [1], [0, 0, 1, 1], [], []>} : vector<16x64xf32>, vector<64x2xf32>, vector<16x2xf32> -> vector<16x2xf32>
      %83 = vector.broadcast %70 : vector<16x1xf32> to vector<16x2xf32>
      %84 = arith.addf %82, %83 : vector<16x2xf32>
      %cst_51 = arith.constant 0.000000e+00 : f32
      %85 = vector.broadcast %cst_51 : f32 to vector<16x2xf32>
      %86 = arith.maximumf %84, %85 : vector<16x2xf32>
      %87 = vector.extract_strided_slice %81 {offsets = [0, 0], sizes = [16, 1], strides = [1, 1]} : vector<16x2xf32> to vector<16x1xf32>
      %88 = vector.extract_strided_slice %81 {offsets = [0, 1], sizes = [16, 1], strides = [1, 1]} : vector<16x2xf32> to vector<16x1xf32>
      %89 = arith.subf %87, %88 : vector<16x1xf32>
      %cst_52 = arith.constant 2.500000e-01 : f32
      %90 = vector.broadcast %cst_52 : f32 to vector<16x1xf32>
      %91 = arith.mulf %89, %90 : vector<16x1xf32>
      %cst_53 = arith.constant dense<0.000000e+00> : vector<64x2xf32>
      %92 = tpu.matmul %67, %86, %cst_53 {dimension_numbers = #tpu.dot_dimension_numbers<[1], [0], [0], [1], [0, 0, 1, 1], [], []>} : vector<64x16xf32>, vector<16x2xf32>, vector<64x2xf32> -> vector<64x2xf32>
      %93 = vector.extract_strided_slice %92 {offsets = [0, 0], sizes = [64, 1], strides = [1, 1]} : vector<64x2xf32> to vector<64x1xf32>
      %94 = vector.extract_strided_slice %92 {offsets = [0, 1], sizes = [64, 1], strides = [1, 1]} : vector<64x2xf32> to vector<64x1xf32>
      %95 = arith.subf %93, %94 : vector<64x1xf32>
      %96 = vector.extract_strided_slice %92 {offsets = [0, 1], sizes = [64, 1], strides = [1, 1]} : vector<64x2xf32> to vector<64x1xf32>
      %97 = arith.addf %96, %71 : vector<64x1xf32>
      %cst_54 = arith.constant 0.000000e+00 : f32
      %98 = vector.broadcast %cst_54 : f32 to vector<48x1xf32>
      %99 = tpu.concatenate %91, %98 in 0 : vector<16x1xf32>, vector<48x1xf32> -> vector<64x1xf32>
      %100 = tpu.concatenate %99, %95, %97 in 1 : vector<64x1xf32>, vector<64x1xf32>, vector<64x1xf32> -> vector<64x3xf32>
      %c0_55 = arith.constant 0 : index
      %c0_56 = arith.constant 0 : index
      %c0_57 = arith.constant 0 : index
      %101 = vector.load %arg5[%c0_55, %c0_56, %c0_57] : memref<1x64x3xf32, #tpu.memory_space<vmem>>, vector<1x64x3xf32>
      %102 = vector.shape_cast %101 : vector<1x64x3xf32> to vector<64x3xf32>
      %103 = vector.shape_cast %100 : vector<64x3xf32> to vector<1x64x3xf32>
      tpu.vector_store %arg5[%c0_55, %c0_56, %c0_57], %103 {strides = array<i32>} : memref<1x64x3xf32, #tpu.memory_space<vmem>>, vector<1x64x3xf32>,
    } else {
    }
    return
  }
  func.func @transform_0(%arg0: i32, %arg1: i32) -> (i32, i32, i32) {
    %c0_i32 = arith.constant 0 : i32
    %c0_i32_0 = arith.constant 0 : i32
    return %arg0, %c0_i32, %arg1 : i32, i32, i32
  }
  func.func @transform_1(%arg0: i32, %arg1: i32) -> (i32, i32) {
    %c0_i32 = arith.constant 0 : i32
    %c0_i32_0 = arith.constant 0 : i32
    %c0_i32_1 = arith.constant 0 : i32
    return %c0_i32, %c0_i32_0 : i32, i32
  }
  func.func @transform_2(%arg0: i32, %arg1: i32) -> (i32, i32) {
    %c0_i32 = arith.constant 0 : i32
    %c0_i32_0 = arith.constant 0 : i32
    %c0_i32_1 = arith.constant 0 : i32
    return %c0_i32, %c0_i32_0 : i32, i32
  }
  func.func @transform_3(%arg0: i32, %arg1: i32) -> (i32, i32, i32) {
    %c0_i32 = arith.constant 0 : i32
    %c0_i32_0 = arith.constant 0 : i32
    %c0_i32_1 = arith.constant 0 : i32
    return %arg0, %c0_i32, %c0_i32_0 : i32, i32, i32
  }
}

</mosaic_0001>

<bundles_post_ra>
// kernel: tpu_custom_call.1
= control target key start
LH: loop header
LB: loop body
LE: loop exit
PB: predicated region body
PF: predicated region fallthrough
CT: control target
= control target key end

     0   :  { %s1576_s12 = smov 0   ;;  %s1578_s13 = smov 0   ;;  %s1925_s0 = inlined_call_operand.vmem [shape: f32[2,64,256], index: 0, kind: input, shape index: {}]   ;;  %s1926_s1 = inlined_call_operand.vmem [shape: f32[120,64], index: 1, kind: input, shape index: {}]   ;;  %s1927_s2 = inlined_call_operand.vmem [shape: f32[120,1], index: 2, kind: input, shape index: {}]   ;;  %s1928_s3 = inlined_call_operand.vmem [shape: f32[2,64,3], index: 3, kind: output, shape index: {}]  }
   0x1   :  { %s1580_s14 = smov 0   ;;  %s1582_s15 = smov 0  }
   0x2   :  { %s1584_s16 = smov 0   ;;  %s1586_s17 = smov 0  }
   0x3   :  { %s1588_s18 = smov 0  }
   0x4 LB: > { %s22_s19 = sadd.s32 1, %s1537_s16  ;;  %s25_s20 = sadd.s32 1, %s1541_s17  ;;  %s1545_s18 = sphi %s1588_s18, %s13_s18   ;;  %s1541_s17 = sphi %s1586_s17, %s1934_s17   ;;  %s1537_s16 = sphi %s1584_s16, %s1933_s16   ;;  %s1533_s15 = sphi %s1582_s15, %s1932_s15   ;;  %s1529_s14 = sphi %s1580_s14, %s1931_s14   ;;  %s1525_s13 = sphi %s1578_s13, %s1930_s13   ;;  %s1521_s12 = sphi %s1576_s12, %s1929_s12  }
   0x5   : > { %p23_p0 = scmp.ge.s32.totalorder %s22_s19, 2  ;;  %p41_p1 = scmp.ne.s32.totalorder %s1525_s13, %s1521_s12 }
   0x6   : > { %p42_p2 = scmp.eq.s32.totalorder %s1545_s18, 0  ;;  %s34_s24 = sadd.s32 1, %s1525_s13 }
   0x7   : > { %s1936_s19 = smov (%p23_p0, %s22_s19), 0  ;;  %s1938_s20 = smov (!%p23_p0, %s25_s20), %s1541_s17 }
   0x8   : > { %p43_p3 = por %p42_p2, %p41_p1  ;;  %p27_p4 = scmp.ge.s32.totalorder %s1938_s20, 2 }
   0x9   : > { %s30_s21 = ssub.s32 %s1537_s16, %s1936_s19  ;;  %p1230_p6 = scmp.ge.s32.totalorder %s1545_s18, 4 }
   0xa   : > { %s1940_s20 = smov (%p27_p4, %s1938_s20), 0 }
   0xb   : > { %s29_s22 = ssub.s32 %s1541_s17, %s1940_s20  ;;  %141 = sbr.rel (%p1230_p6) target bundleno = 28 (0x1c), region = 24 }
   0xc   : > { %s31_s23 = sor.u32 %s30_s21, %s29_s22 }
   0xd   : > { %p32_p5 = scmp.eq.s32.totalorder %s31_s23, 0 }
   0xf   : > { %s1627_s25 = scalar_select %p32_p5, %s1525_s13, %s34_s24  }
  0x12   : > { %144 = sbr.rel (!%p43_p3) target bundleno = 28 (0x1c), region = 28  ;;  %s146_s26 = sand.u32 (%p43_p3), 1, %s1525_s13  }
  0x13   : > { %s1232_s27 = sshll.u32 (%p43_p3), %s1541_s17, 4  ;;  %s1231_s28 = sshll.u32 (%p43_p3), %s146_s26, 6 }
  0x14   : > { %s150_s29 = sadd.s32 (%p43_p3), %s1537_s16, %s1232_s27  ;;  %s148_s7 = scalar_lea.vmem (%p43_p3), [#allocation5], %s1231_s28 }
  0x15   : > { %s1233_s30 = sshll.u32 (%p43_p3), %s150_s29, 3 }
  0x16   : > { %s152_s6 = scalar_lea.vmem (%p43_p3), %s1925_s0, %s1233_s30 }
  0x17   : > { %v194_v0 = vld [vmem:[%s152_s6] sm:$0xff] (%p43_p3)  ;;  %v196_v1 = vld [vmem:[%s152_s6 + $0x10] sm:$0xff] (%p43_p3) }
  0x18   : > { %v198_v2 = vld [vmem:[%s152_s6 + $0x20] sm:$0xff] (%p43_p3)  ;;  %195 = vst [vmem:[%s148_s7] sm:$0xff] (%p43_p3), %v194_v0  ;;  %197 = vst [vmem:[%s148_s7 + $0x8] sm:$0xff] (%p43_p3), %v196_v1  ;;  %v200_v3 = vld [vmem:[%s152_s6 + $0x30] sm:$0xff] (%p43_p3) }
  0x19   : > { %199 = vst [vmem:[%s148_s7 + $0x10] sm:$0xff] %v198_v2  ;;  %v202_v4 = vld [vmem:[%s152_s6 + $0x40] sm:$0xff]  ;;  %v204_v5 = vld [vmem:[%s152_s6 + $0x50] sm:$0xff]  ;;  %201 = vst [vmem:[%s148_s7 + $0x18] sm:$0xff] %v200_v3 }
  0x1a   : > { %203 = vst [vmem:[%s148_s7 + $0x20] sm:$0xff] %v202_v4  ;;  %205 = vst [vmem:[%s148_s7 + $0x28] sm:$0xff] %v204_v5  ;;  %v206_v6 = vld [vmem:[%s152_s6 + $0x60] sm:$0xff]  ;;  %v208_v7 = vld [vmem:[%s152_s6 + $0x70] sm:$0xff] }
  0x1b   : > { %207 = vst [vmem:[%s148_s7 + $0x30] sm:$0xff] %v206_v6  ;;  %209 = vst [vmem:[%s148_s7 + $0x38] sm:$0xff] %v208_v7 }
  0x1c PF: > { %p1234_p7 = scmp.ge.s32.totalorder %s1545_s18, 1  ;;  %p214_p8 = scmp.lt.s32.totalorder %s1545_s18, 5 }
  0x1e   : > { %p215_p9 = pnand %p1234_p7, %p214_p8 }
  0x1f   : > { %s221_s8 = sand.u32 (!%p215_p9), 1, %s1521_s12   ;;  %p244_p10 = scmp.lt.s32.totalorder (!%p215_p9), %s1533_s15, 1 }
  0x20   : > { %218 = sbr.rel (%p215_p9) target bundleno = 1828 (0x724), region = 66  ;;  %s1235_s9 = sshll.u32 (!%p215_p9), %s221_s8, 6 }
  0x21   : > { %s1646_s23 = scalar_lea.vmem (!%p215_p9), [#allocation5], %s1235_s9  ;;  %p1238_p11 = scmp.ne.s32.totalorder (!%p215_p9), %s1529_s14, 0 }
  0x27   : > { %s1942_s15 = smov (!%p244_p10, %s1533_s15), 1  ;;  %253 = sbr.rel (%p1238_p11) target bundleno = 46 (0x2e), region = 74 }
  0x28   : > { %s1259_s10 = sshll.u32 %s1942_s15, 6  ;;  %vm254_vm0 = vcmask (!%p1238_p11), 1024   ;;  %vm257_vm1 = vcmask (!%p1238_p11), 15360   ;;  %v1547_v8 = vmov (!%p1238_p11), -inf   ;;  %v1548_v9 = vmov (!%p1238_p11), 0.0  }
  0x29   : > { %s1644_s22 = scalar_lea.vmem %s1928_s3, %s1259_s10  ;;  %255 = vst.msk [vmem:[#allocation2] sm:$0x3] (!%p1238_p11), %vm254_vm0, %v1547_v8  ;;  %256 = vst.msk [vmem:[#allocation3] sm:$0x3] (!%p1238_p11), %vm254_vm0, %v1548_v9 }
  0x2a   : > { %258 = vst.msk [vmem:[#allocation4] sm:$0xff] (!%p1238_p11), %vm257_vm1, %v1548_v9  ;;  %259 = vst.msk [vmem:[#allocation4 + $0x8] sm:$0xff] (!%p1238_p11), %vm257_vm1, %v1548_v9 }
  0x2b   : > { %260 = vst.msk [vmem:[#allocation4 + $0x10] sm:$0xff] (!%p1238_p11), %vm257_vm1, %v1548_v9  ;;  %261 = vst.msk [vmem:[#allocation4 + $0x18] sm:$0xff] (!%p1238_p11), %vm257_vm1, %v1548_v9 }
  0x2c   : > { %262 = vst.msk [vmem:[#allocation4 + $0x20] sm:$0xff] (!%p1238_p11), %vm257_vm1, %v1548_v9  ;;  %263 = vst.msk [vmem:[#allocation4 + $0x28] sm:$0xff] (!%p1238_p11), %vm257_vm1, %v1548_v9 }
  0x2d   : > { %264 = vst.msk [vmem:[#allocation4 + $0x30] sm:$0xff] (!%p1238_p11), %vm257_vm1, %v1548_v9  ;;  %265 = vst.msk [vmem:[#allocation4 + $0x38] sm:$0xff] (!%p1238_p11), %vm257_vm1, %v1548_v9 }
  0x2e PF: > { %v1650_v10 = vld [vmem:[%s1646_s23] sm:$0xff]  ;;  %v1653_v11 = vld [vmem:[%s1646_s23 + $0x8] sm:$0xff]  ;;  %v1656_v12 = vld [vmem:[%s1646_s23 + $0x10] sm:$0xff]  ;;  %v1549_v13 = vmov 0.0   ;;  %vm1550_vm2 = vmmov 0   ;;  %v1551_v16 = vmov 0   ;;  %v357_v42 = vlaneseq }
  0x2f   : > { %1299 = vmatprep.subr.bf16.mxu0 %v1549_v13  ;;  %v277_v14 = vpack.c.bf16 %v1653_v11, %v1650_v10  ;;  %v1661_v15 = vld [vmem:[%s1646_s23 + $0x18] sm:$0xff]  ;;  %1307 = vmatprep.mubr.msk.bf16.mxu0 %vm1550_vm2, %v1549_v13  ;;  %v1669_v19 = vld [vmem:[%s1646_s23 + $0x20] sm:$0xff]  ;;  %v1672_v20 = vld [vmem:[%s1646_s23 + $0x28] sm:$0xff]  ;;  %vm286_vm3 = vcmask 523264   ;;  %vm332_vm4 = vcmask 1041408   ;;  %vm354_vm5 = vcmask 1024  }
  0x30   : > { %1479 = vset.pattern.permute.xlu0 %v1551_v16  ;;  %1480 = vset.pattern.permute.xlu1 %v1551_v16  ;;  %v278_v17 = vpack.c.bf16 %v1661_v15, %v1656_v12  ;;  %v276_v18 = vld [vmem:[%s1927_s2] sm:$0x3]  ;;  %v279_v21 = vpack.c.bf16 %v1672_v20, %v1669_v19  ;;  %v1677_v22 = vld [vmem:[%s1646_s23 + $0x30] sm:$0xff]  ;;  %v358_v43 = vshrl.u32 %v357_v42, 7  ;;  %s1552_s27 = smov 1   ;;  %vm465_vm6 = vcmask 7168  }
  0x31   : > { %1300 = vmatpush3.bf16.msra.mxu0 %v277_v14  ;;  %283 = vperm.xlu0 %1479, %v276_v18   ;;  %v1680_v23 = vld [vmem:[%s1646_s23 + $0x38] sm:$0xff]  ;;  %vm474_vm7 = vcmask 15360   ;;  %p1240_p12 = scmp.ne.s32.totalorder %s1529_s14, 1 }
  0x32   : > { %1301 = vmatprep.subr.bf16.mxu0 %v1549_v13  ;;  %v280_v24 = vpack.c.bf16 %v1680_v23, %v1677_v22  ;;  %v274_v25 = vld [vmem:[%s1926_s1] sm:$0x3]  ;;  %v359_v44 = vsub.s32 0, %v358_v43  ;;  %v387_v53 = vsub.s32 1, %v358_v43  ;;  %s1553_s28 = smov (!%p1240_p12), 1   ;;  %vm666_vm8 = vcmask (!%p1240_p12), 130048  }
  0x33   : > { %v275_v26 = vpack.c.bf16 %v274_v25, %v274_v25  ;;  %v331_v35 = vld [vmem:[#allocation2] sm:$0x3]  ;;  %v417_v25 = vld [vmem:[#allocation4 + $0x20] sm:$0xff]  ;;  %s1555_s26 = smov (!%p1240_p12), 127   ;;  %vm1144_vm9 = vcmask (!%p1240_p12), 23552  }
  0x35   : > { %1302 = vmatpush3.bf16.msra.mxu0 %v278_v17 }
  0x36   : > { %1303 = vmatprep.subr.bf16.mxu0 %v1549_v13 }
  0x39   : > { %1304 = vmatpush3.bf16.msra.mxu0 %v279_v21  ;;  %v414_v21 = vld [vmem:[#allocation4 + $0x8] sm:$0xff] }
  0x3a   : > { %1305 = vmatprep.subr.bf16.mxu0 %v1549_v13 }
  0x3d   : > { %1306 = vmatpush3.bf16.msra.mxu0 %v280_v24  ;;  %v416_v24 = vld [vmem:[#allocation4 + $0x18] sm:$0xff] }
  0x40   : > { %1308 = vmatmul.mubr.msk.bf16.vlgmr.msra.gmra.mrb[0].mxu0 %vm286_vm3, %v275_v26  ;;  %v418_v26 = vld [vmem:[#allocation4 + $0x28] sm:$0xff] }
  0xb0   : > { %v284_v27 = vpop.permute.xlu0 %283 }
 0x113   : > { %v324_v28 = vpop.f32.mrb[0].mxu0 }
 0x114   : > { %v325_v29 = vadd.f32 %v324_v28, %v284_v27  ;;  %v1309_v30 = vpop.f32.mrb[1].mxu0  ;;  %v419_v27 = vld [vmem:[#allocation4 + $0x30] sm:$0xff]  ;;  %v420_v28 = vld [vmem:[#allocation4 + $0x38] sm:$0xff] }
 0x115   : > { %v327_v31 = vpop.f32.mrb[2].mxu0 }
 0x116   : > { %v330_v32 = vmax.f32 %v325_v29, 0.0  ;;  %v1310_v33 = vpop.f32.mrb[3].mxu0 }
 0x118   : > { %v333_v34 = vsel %vm332_vm4, %v330_v32, -inf }
 0x119   : > { %334 = vmax.xlane.f32.xlu0 %v333_v34 }
 0x1a6   : > { %v335_v36 = vpop.xlane.xlu0 %334 }
 0x1a7   : > { %v336_v37 = vmax.f32 %v331_v35, %v335_v36 }
 0x1a9   : > { %v337_v38 = vsub.f32 %v331_v35, %v336_v37  ;;  %356 = vst.msk [vmem:[#allocation2] sm:$0x3] %vm354_vm5, %v336_v37  ;;  %342 = vperm.xlu1 %1480, %v336_v37  }
 0x1ab   : > { %v338_v63 = vmul.f32 1.442695, %v337_v38 }
 0x228   : > { %v343_v39 = vpop.permute.xlu1 %342 }
 0x229   : > { %v345_v40 = vsub.f32 %v330_v32, %v343_v39 }
 0x22b   : > { %v346_v41 = vmul.f32 1.442695, %v345_v40 }
 0x22d   : > { %1481 = vpow2.f32 %v346_v41 }
 0x22e   : > { %1483 = vpow2.f32 %v338_v63 }
 0x237   : > { %v1482_v45 = vpop.eup %1481 }
 0x238   : > { %v360_v46 = vrot.slane %v1482_v45, %v359_v44  ;;  %v388_v54 = vrot.slane %v1482_v45, %v387_v53  ;;  %v350_v2 = vsel %vm332_vm4, %v1482_v45, 0.0  ;;  %v1484_v3 = vpop.eup %1483 }
 0x239   : > { %v444_v4 = vrot.slane %v1484_v3, %v387_v53  ;;  %v424_v17 = vrot.slane %v1484_v3, %v359_v44 }
 0x23a   : > { %v362_v47 = vmul.f32 %v360_v46, %v1653_v11  ;;  %v361_v48 = vmul.f32 %v360_v46, %v1650_v10  ;;  %v363_v49 = vmul.f32 %v360_v46, %v1656_v12  ;;  %v364_v50 = vmul.f32 %v360_v46, %v1661_v15 }
 0x23b   : > { %v365_v51 = vmul.f32 %v360_v46, %v1669_v19  ;;  %v366_v52 = vmul.f32 %v360_v46, %v1672_v20  ;;  %v367_v55 = vmul.f32 %v360_v46, %v1677_v22  ;;  %v368_v56 = vmul.f32 %v360_v46, %v1680_v23 }
 0x23c   : > { %371 = vadd.xlane.f32.xlu0 %v362_v47  ;;  %369 = vadd.xlane.f32.xlu1 %v361_v48  ;;  %v389_v57 = vmul.f32 %v388_v54, %v1650_v10  ;;  %v390_v58 = vmul.f32 %v388_v54, %v1653_v11  ;;  %v391_v59 = vmul.f32 %v388_v54, %v1656_v12 }
 0x23d   : > { %v392_v60 = vmul.f32 %v388_v54, %v1661_v15  ;;  %v393_v61 = vmul.f32 %v388_v54, %v1669_v19  ;;  %v394_v62 = vmul.f32 %v388_v54, %v1672_v20  ;;  %v395_v0 = vmul.f32 %v388_v54, %v1677_v22  ;;  %v348_v20 = vld [vmem:[#allocation3] sm:$0x3]  ;;  %v413_v22 = vld [vmem:[#allocation4] sm:$0xff] }
 0x23e   : > { %v396_v1 = vmul.f32 %v388_v54, %v1680_v23  ;;  %v415_v23 = vld [vmem:[#allocation4 + $0x10] sm:$0xff]  ;;  %v426_v29 = vmul.f32 %v424_v17, %v414_v21  ;;  %v425_v30 = vmul.f32 %v424_v17, %v413_v22  ;;  %v349_v33 = vmul.f32 %v1484_v3, %v348_v20 }
 0x23f   : > { %v427_v34 = vmul.f32 %v424_v17, %v415_v23  ;;  %v428_v35 = vmul.f32 %v424_v17, %v416_v24  ;;  %v429_v36 = vmul.f32 %v424_v17, %v417_v25  ;;  %v430_v37 = vmul.f32 %v424_v17, %v418_v26 }
 0x240   : > { %373 = vadd.xlane.f32.xlu0 %v363_v49  ;;  %375 = vadd.xlane.f32.xlu1 %v364_v50  ;;  %v431_v38 = vmul.f32 %v424_v17, %v419_v27  ;;  %v432_v39 = vmul.f32 %v424_v17, %v420_v28  ;;  %v551_v17 = vld [vmem:[%s1927_s2 + $0x18] sm:$0xff] (!%p1240_p12) }
 0x244   : > { %377 = vadd.xlane.f32.xlu0 %v365_v51  ;;  %379 = vadd.xlane.f32.xlu1 %v366_v52 }
 0x248   : > { %381 = vadd.xlane.f32.xlu0 %v367_v55  ;;  %383 = vadd.xlane.f32.xlu1 %v368_v56 }
 0x24c   : > { %397 = vadd.xlane.f32.xlu0 %v389_v57  ;;  %399 = vadd.xlane.f32.xlu1 %v390_v58 }
 0x250   : > { %401 = vadd.xlane.f32.xlu0 %v391_v59  ;;  %403 = vadd.xlane.f32.xlu1 %v392_v60 }
 0x254   : > { %405 = vadd.xlane.f32.xlu0 %v393_v61  ;;  %407 = vadd.xlane.f32.xlu1 %v394_v62 }
 0x258   : > { %409 = vadd.xlane.f32.xlu0 %v395_v0  ;;  %411 = vadd.xlane.f32.xlu1 %v396_v1 }
 0x25c   : > { %351 = vadd.xlane.f32.xlu0 %v350_v2 }
 0x269   : > { %446 = vrot.lane.b32.xlu1 %v444_v4, %s1552_s27 }
 0x2c9   : > { %v372_v5 = vpop.xlane.xlu0 %371  ;;  %v370_v6 = vpop.xlane.xlu1 %369 }
 0x2ca   : > { %v434_v40 = vadd.f32 %v426_v29, %v372_v5  ;;  %v433_v41 = vadd.f32 %v425_v30, %v370_v6 }
 0x2cd   : > { %v374_v7 = vpop.xlane.xlu0 %373  ;;  %v376_v8 = vpop.xlane.xlu1 %375 }
 0x2ce   : > { %v435_v42 = vadd.f32 %v427_v34, %v374_v7  ;;  %v436_v43 = vadd.f32 %v428_v35, %v376_v8 }
 0x2d1   : > { %v378_v9 = vpop.xlane.xlu0 %377  ;;  %v380_v10 = vpop.xlane.xlu1 %379 }
 0x2d2   : > { %v437_v44 = vadd.f32 %v429_v36, %v378_v9  ;;  %v438_v45 = vadd.f32 %v430_v37, %v380_v10 }
 0x2d5   : > { %v382_v11 = vpop.xlane.xlu0 %381  ;;  %v384_v12 = vpop.xlane.xlu1 %383 }
 0x2d6   : > { %v439_v46 = vadd.f32 %v431_v38, %v382_v11  ;;  %v440_v47 = vadd.f32 %v432_v39, %v384_v12  ;;  %v535_v12 = vld [vmem:[%s1926_s1 + $0x8] sm:$0xff] (!%p1240_p12) }
 0x2d7   : > { %1327 = vmatprep.mubr.msk.f32.mxu0 (!%p1240_p12), %vm286_vm3, %v535_v12  ;;  %v556_v12 = vld [vmem:[%s1927_s2 + $0x40] sm:$0xff] (!%p1240_p12) }
 0x2d9   : > { %v398_v13 = vpop.xlane.xlu0 %397  ;;  %v400_v14 = vpop.xlane.xlu1 %399 }
 0x2dd   : > { %v402_v15 = vpop.xlane.xlu0 %401  ;;  %v404_v16 = vpop.xlane.xlu1 %403 }
 0x2e1   : > { %v406_v18 = vpop.xlane.xlu0 %405  ;;  %v408_v19 = vpop.xlane.xlu1 %407 }
 0x2e5   : > { %v410_v31 = vpop.xlane.xlu0 %409  ;;  %v412_v32 = vpop.xlane.xlu1 %411 }
 0x2e9   : > { %v352_v48 = vpop.xlane.xlu0 %351  ;;  %v447_v49 = vpop.permute.xlu1 %446 }
 0x2ea   : > { %v353_v50 = vadd.f32 %v352_v48, %v349_v33  ;;  %v449_v51 = vmul.f32 %v447_v49, %v413_v22  ;;  %v450_v52 = vmul.f32 %v447_v49, %v414_v21  ;;  %v451_v53 = vmul.f32 %v447_v49, %v415_v23 }
 0x2eb   : > { %v452_v54 = vmul.f32 %v447_v49, %v416_v24  ;;  %v453_v55 = vmul.f32 %v447_v49, %v417_v25  ;;  %v454_v56 = vmul.f32 %v447_v49, %v418_v26  ;;  %v455_v57 = vmul.f32 %v447_v49, %v419_v27 }
 0x2ec   : > { %355 = vst.msk [vmem:[#allocation3] sm:$0x3] %vm354_vm5, %v353_v50  ;;  %v456_v58 = vmul.f32 %v447_v49, %v420_v28  ;;  %v457_v59 = vadd.f32 %v449_v51, %v398_v13  ;;  %v458_v60 = vadd.f32 %v450_v52, %v400_v14  ;;  %v459_v61 = vadd.f32 %v451_v53, %v402_v15  ;;  %v550_v13 = vld [vmem:[%s1927_s2 + $0x10] sm:$0xff] (!%p1240_p12)  ;;  %v549_v15 = vld [vmem:[%s1927_s2 + $0x8] sm:$0xff] (!%p1240_p12) }
 0x2ed   : > { %v460_v62 = vadd.f32 %v452_v54, %v404_v16  ;;  %v461_v63 = vadd.f32 %v453_v55, %v406_v18  ;;  %v462_v0 = vadd.f32 %v454_v56, %v408_v19  ;;  %v463_v1 = vadd.f32 %v455_v57, %v410_v31  ;;  %486 = sbr.rel (%p1240_p12) target bundleno = 1828 (0x724), region = 78  ;;  %v553_v16 = vld [vmem:[%s1927_s2 + $0x28] sm:$0xff] (!%p1240_p12)  ;;  %v554_v18 = vld [vmem:[%s1927_s2 + $0x30] sm:$0xff] (!%p1240_p12)  ;;  %v552_v19 = vld [vmem:[%s1927_s2 + $0x20] sm:$0xff] (!%p1240_p12) }
 0x2ee   : > { %v464_v2 = vadd.f32 %v456_v58, %v412_v32  ;;  %v466_v3 = vsel %vm465_vm6, %v433_v41, %v457_v59  ;;  %v467_v4 = vsel %vm465_vm6, %v434_v40, %v458_v60  ;;  %v468_v5 = vsel %vm465_vm6, %v435_v42, %v459_v61  ;;  %v536_v60 = vld [vmem:[%s1926_s1 + $0x10] sm:$0xff] (!%p1240_p12)  ;;  %v537_v61 = vld [vmem:[%s1926_s1 + $0x18] sm:$0xff] (!%p1240_p12) }
 0x2ef   : > { %v469_v6 = vsel %vm465_vm6, %v436_v43, %v460_v62  ;;  %v470_v7 = vsel %vm465_vm6, %v437_v44, %v461_v63  ;;  %v471_v8 = vsel %vm465_vm6, %v438_v45, %v462_v0  ;;  %v472_v9 = vsel %vm465_vm6, %v439_v46, %v463_v1  ;;  %475 = vst.msk [vmem:[#allocation4] sm:$0xff] %vm474_vm7, %v466_v3 }
 0x2f0   : > { %476 = vst.msk [vmem:[#allocation4 + $0x8] sm:$0xff] %vm474_vm7, %v467_v4  ;;  %477 = vst.msk [vmem:[#allocation4 + $0x10] sm:$0xff] %vm474_vm7, %v468_v5  ;;  %v473_v10 = vsel %vm465_vm6, %v440_v47, %v464_v2  ;;  %v1554_v14 = vmov (!%p1240_p12), 0   ;;  %1334 = vmatprep.mubr.msk.f32.mxu1 (!%p1240_p12), %vm666_vm8, %v537_v61 }
 0x2f1   : > { %478 = vst.msk [vmem:[#allocation4 + $0x18] sm:$0xff] %vm474_vm7, %v469_v6  ;;  %479 = vst.msk [vmem:[#allocation4 + $0x20] sm:$0xff] %vm474_vm7, %v470_v7  ;;  %1486 = vset.pattern.permute.xlu1 (!%p1240_p12), %v1554_v14  ;;  %1485 = vset.pattern.permute.xlu0 (!%p1240_p12), %v1554_v14  ;;  %v538_v7 = vld [vmem:[%s1926_s1 + $0x20] sm:$0xff] (!%p1240_p12)  ;;  %v558_v14 = vld [vmem:[%s1927_s2 + $0x50] sm:$0xff] (!%p1240_p12) }
 0x2f2   : > { %480 = vst.msk [vmem:[#allocation4 + $0x28] sm:$0xff] %vm474_vm7, %v471_v8  ;;  %481 = vst.msk [vmem:[#allocation4 + $0x30] sm:$0xff] %vm474_vm7, %v472_v9  ;;  %570 = vperm.xlu1 (!%p1240_p12), %1486, %v550_v13   ;;  %v539_v8 = vld [vmem:[%s1926_s1 + $0x28] sm:$0xff] (!%p1240_p12)  ;;  %v540_v9 = vld [vmem:[%s1926_s1 + $0x30] sm:$0xff] (!%p1240_p12) }
 0x2f3   : > { %482 = vst.msk [vmem:[#allocation4 + $0x38] sm:$0xff] %vm474_vm7, %v473_v10  ;;  %v1242_v11 = vld [vmem:[#allocation3 + $0x1] ss:$0 sm:$0xff] (!%p1240_p12)  ;;  %v1241_v20 = vld [vmem:[#allocation3] ss:$0 sm:$0xff] (!%p1240_p12)  ;;  %v541_v10 = vld [vmem:[%s1926_s1 + $0x38] sm:$0xff] (!%p1240_p12) }
 0x2f4   : > { %515 = vrot.lane.b32.xlu0 %v1242_v11, %s1553_s28  ;;  %1487 = vrcp.f32 %v1241_v20  ;;  %v547_v11 = vld [vmem:[%s1926_s1 + $0x68] sm:$0xff]  ;;  %v555_v13 = vld [vmem:[%s1927_s2 + $0x38] sm:$0xff] }
 0x2f6   : > { %752 = vperm.xlu1 %1486, %v553_v16   ;;  %v487_v22 = vld [vmem:[#allocation4] sm:$0xff] }
 0x2f7   : > { %v488_v24 = vld [vmem:[#allocation4 + $0x8] sm:$0xff]  ;;  %v489_v25 = vld [vmem:[#allocation4 + $0x10] sm:$0xff]  ;;  %v560_v16 = vld [vmem:[%s1927_s2 + $0x60] sm:$0xff] }
 0x2f8   : > { %565 = vperm.xlu0 %1485, %v549_v15   ;;  %v490_v26 = vld [vmem:[#allocation4 + $0x18] sm:$0xff]  ;;  %v491_v31 = vld [vmem:[#allocation4 + $0x20] sm:$0xff] }
 0x2f9   : > { %v492_v32 = vld [vmem:[#allocation4 + $0x28] sm:$0xff]  ;;  %v493_v46 = vld [vmem:[#allocation4 + $0x30] sm:$0xff] }
 0x2fa   : > { %757 = vperm.xlu1 %1486, %v554_v18   ;;  %v494_v47 = vld [vmem:[#allocation4 + $0x38] sm:$0xff]  ;;  %v557_v15 = vld [vmem:[%s1927_s2 + $0x48] sm:$0xff] }
 0x2fc   : > { %658 = vperm.xlu0 %1485, %v551_v17   ;;  %v559_v17 = vld [vmem:[%s1927_s2 + $0x58] sm:$0xff] }
 0x2fe   : > { %663 = vperm.xlu1 %1486, %v552_v19   ;;  %v1488_v23 = vpop.eup %1487 }
 0x2ff   : > { %v501_v27 = vmul.f32 %v1488_v23, %v487_v22  ;;  %v502_v28 = vmul.f32 %v1488_v23, %v488_v24  ;;  %v503_v29 = vmul.f32 %v1488_v23, %v489_v25  ;;  %v504_v30 = vmul.f32 %v1488_v23, %v490_v26 }
 0x300   : > { %v505_v38 = vmul.f32 %v1488_v23, %v491_v31  ;;  %v506_v39 = vmul.f32 %v1488_v23, %v492_v32  ;;  %v507_v50 = vmul.f32 %v1488_v23, %v493_v46  ;;  %v508_v51 = vmul.f32 %v1488_v23, %v494_v47  ;;  %1032 = vrot.lane.b32.xlu0 %v555_v13, %s1553_s28 }
 0x302   : > { %1034 = vrot.lane.b32.xlu1 %v556_v12, %s1553_s28 }
 0x304   : > { %1036 = vrot.lane.b32.xlu0 %v557_v15, %s1553_s28 }
 0x306   : > { %1038 = vrot.lane.b32.xlu1 %v558_v14, %s1553_s28 }
 0x308   : > { %1040 = vrot.lane.b32.xlu0 %v559_v17, %s1553_s28 }
 0x30a   : > { %1042 = vrot.lane.b32.xlu1 %v560_v16, %s1553_s28 }
 0x366   : > { %v516_v21 = vpop.permute.xlu0 %515 }
 0x367   : > { %1489 = vrcp.f32 %v516_v21 }
 0x371   : > { %v1490_v33 = vpop.eup %1489  ;;  %v571_v62 = vpop.permute.xlu1 %570 }
 0x372   : > { %v519_v34 = vmul.f32 %v1490_v33, %v487_v22  ;;  %v520_v35 = vmul.f32 %v1490_v33, %v488_v24  ;;  %v521_v36 = vmul.f32 %v1490_v33, %v489_v25  ;;  %v522_v37 = vmul.f32 %v1490_v33, %v490_v26 }
 0x373   : > { %v523_v40 = vmul.f32 %v1490_v33, %v491_v31  ;;  %v524_v41 = vmul.f32 %v1490_v33, %v492_v32  ;;  %v525_v54 = vmul.f32 %v1490_v33, %v493_v46  ;;  %v526_v55 = vmul.f32 %v1490_v33, %v494_v47  ;;  %v543_v31 = vld [vmem:[%s1926_s1 + $0x48] sm:$0xff]  ;;  %v544_v32 = vld [vmem:[%s1926_s1 + $0x50] sm:$0xff]  ;;  %v545_v33 = vld [vmem:[%s1926_s1 + $0x58] sm:$0xff] }
 0x374   : > { %v527_v42 = vsel %vm465_vm6, %v501_v27, %v519_v34  ;;  %v528_v43 = vsel %vm465_vm6, %v502_v28, %v520_v35  ;;  %v529_v44 = vsel %vm465_vm6, %v503_v29, %v521_v36  ;;  %v530_v45 = vsel %vm465_vm6, %v504_v30, %v522_v37  ;;  %v542_v29 = vld [vmem:[%s1926_s1 + $0x40] sm:$0xff]  ;;  %v548_v30 = vld [vmem:[%s1926_s1 + $0x70] sm:$0xff]  ;;  %v561_v47 = vld [vmem:[%s1927_s2 + $0x68] sm:$0xff] }
 0x375   : > { %v1372_v48 = vpack.c.bf16 %v528_v43, %v527_v42  ;;  %v1376_v49 = vpack.c.bf16 %v530_v45, %v529_v44  ;;  %v531_v52 = vsel %vm465_vm6, %v505_v38, %v523_v40  ;;  %v532_v53 = vsel %vm465_vm6, %v506_v39, %v524_v41  ;;  %v753_v20 = vpop.permute.xlu1 %752  ;;  %v546_v34 = vld [vmem:[%s1926_s1 + $0x60] sm:$0xff]  ;;  %v562_v44 = vld [vmem:[%s1927_s2 + $0x70] sm:$0xff] }
 0x376   : > { %v1380_v56 = vpack.c.bf16 %v532_v53, %v531_v52  ;;  %v533_v57 = vsel %vm465_vm6, %v507_v50, %v525_v54  ;;  %v534_v58 = vsel %vm465_vm6, %v508_v51, %v526_v55 }
 0x377   : > { %1373 = vmatprep.subr.bf16.mxu0 %v1372_v48  ;;  %v1384_v59 = vpack.c.bf16 %v534_v58, %v533_v57  ;;  %v566_v0 = vpop.permute.xlu0 %565 }
 0x378   : > { %1375 = vmatpush3.bf16.msra.mxu0 %v1372_v48 }
 0x379   : > { %1377 = vmatprep.subr.bf16.mxu0 %v1376_v49  ;;  %v758_v21 = vpop.permute.xlu1 %757 }
 0x37b   : > { %v659_v45 = vpop.permute.xlu0 %658 }
 0x37c   : > { %1379 = vmatpush3.bf16.msra.mxu0 %v1376_v49 }
 0x37d   : > { %1381 = vmatprep.subr.bf16.mxu0 %v1380_v56  ;;  %v664_v43 = vpop.permute.xlu1 %663 }
 0x37f   : > { %v1033_v51 = vpop.permute.xlu0 %1032 }
 0x380   : > { %1383 = vmatpush3.bf16.msra.mxu0 %v1380_v56 }
 0x381   : > { %1385 = vmatprep.subr.bf16.mxu0 %v1384_v59 }
 0x383   : > { %v1037_v55 = vpop.permute.xlu0 %1036 }
 0x384   : > { %1387 = vmatpush3.bf16.msra.mxu0 %v1384_v59 }
 0x387   : > { %1328 = vmatmul.mubr.msk.f32.vlgmr.msra.gmra.mrb[0].mxu0 %vm286_vm3, %v536_v60  ;;  %v1041_v60 = vpop.permute.xlu0 %1040 }
 0x388   : > { %1360 = vmatprep.mubr.msk.f32.mxu0 %vm666_vm8, %v541_v10 }
 0x45a   : > { %v1329_v63 = vpop.f32.mrb[0].mxu0 }
 0x45b   : > { %v651_v1 = vadd.f32 %v1329_v63, %v571_v62  ;;  %v645_v2 = vpop.f32.mrb[1].mxu0 }
 0x45c   : > { %v646_v3 = vadd.f32 %v645_v2, %v566_v0 }
 0x45d   : > { %v655_v4 = vmax.f32 %v651_v1, 0.0 }
 0x45e   : > { %v654_v5 = vmax.f32 %v646_v3, 0.0 }
 0x460   : > { %v1388_v6 = vpack.c.bf16 %v655_v4, %v654_v5 }
 0x462   : > { %1389 = vmatprep.subr.bf16.mxu1 %v1388_v6 }
 0x463   : > { %1391 = vmatpush3.bf16.msra.mxu1 %v1388_v6 }
 0x464   : > { %1393 = vmatprep.subr.bf16.mxu1 %v1372_v48 }
 0x466   : > { %1335 = vmatmul.mubr.msk.f32.vlgmr.msra.gmra.mrb[0].mxu1 %vm666_vm8, %v538_v7 }
 0x467   : > { %1395 = vmatpush3.bf16.msra.mxu1 %v1372_v48  ;;  %1353 = vmatprep.mubr.msk.f32.mxu1 %vm286_vm3, %v539_v8 }
 0x468   : > { %1397 = vmatprep.subr.bf16.mxu1 %v1376_v49 }
 0x46b   : > { %1399 = vmatpush3.bf16.msra.mxu1 %v1376_v49  ;;  %v1035_v49 = vpop.permute.xlu1 %1034 }
 0x46c   : > { %1401 = vmatprep.subr.bf16.mxu1 %v1380_v56 }
 0x46f   : > { %1403 = vmatpush3.bf16.msra.mxu1 %v1380_v56  ;;  %v1039_v53 = vpop.permute.xlu1 %1038 }
 0x470   : > { %1405 = vmatprep.subr.bf16.mxu1 %v1384_v59 }
 0x473   : > { %1407 = vmatpush3.bf16.msra.mxu1 %v1384_v59  ;;  %v1043_v59 = vpop.permute.xlu1 %1042 }
 0x476   : > { %1354 = vmatmul.mubr.msk.f32.vlgmr.msra.gmra.mrb[2].mxu1 %vm286_vm3, %v540_v9 }
 0x477   : > { %1369 = vmatprep.mubr.msk.f32.mxu1 %vm666_vm8, %v547_v11 }
 0x539   : > { %v1336_v18 = vpop.f32.mrb[0].mxu1 }
 0x53a   : > { %v739_v19 = vpop.f32.mrb[1].mxu1  ;;  %v1841_v46 = vadd.f32 %v1336_v18, %v664_v43 }
 0x53b   : > { %v1846_v48 = vadd.f32 %v739_v19, %v659_v45 }
 0x53c   : > { %v749_v50 = vmax.f32 %v1841_v46, 0.0 }
 0x53d   : > { %v748_v52 = vmax.f32 %v1846_v48, 0.0 }
 0x549   : > { %v1355_v22 = vpop.f32.mrb[2].mxu1 }
 0x54a   : > { %v838_v23 = vadd.f32 %v1355_v22, %v758_v21  ;;  %v832_v24 = vpop.f32.mrb[3].mxu1 }
 0x54b   : > { %v833_v25 = vadd.f32 %v832_v24, %v753_v20 }
 0x54c   : > { %v842_v26 = vmax.f32 %v838_v23, 0.0 }
 0x54d   : > { %v841_v27 = vmax.f32 %v833_v25, 0.0 }
 0x54f   : > { %v1408_v28 = vpack.c.bf16 %v842_v26, %v841_v27 }
 0x551   : > { %1409 = vmatprep.subr.bf16.mxu0 %v1408_v28  ;;  %1412 = vmatprep.subr.bf16.mxu1 %v1408_v28 }
 0x552   : > { %1411 = vmatpush3.bf16.msra.mxu0 %v1408_v28  ;;  %1413 = vmatpush3.bf16.msra.mxu1 %v1408_v28 }
 0x555   : > { %1361 = vmatmul.mubr.msk.f32.vlgmr.msra.gmra.mrb[2].mxu0 %vm666_vm8, %v542_v29  ;;  %1370 = vmatmul.mubr.msk.f32.vlgmr.msra.gmra.mrb[4].mxu1 %vm666_vm8, %v548_v30 }
 0x556   : > { %1363 = vmatprep.mubr.msk.f32.mxu0 %vm666_vm8, %v543_v31 }
 0x559   : > { %1364 = vmatmul.mubr.msk.f32.gmra.mrb[4].mxu0 %vm666_vm8, %v544_v32 }
 0x55a   : > { %1366 = vmatprep.mubr.msk.f32.mxu0 %vm666_vm8, %v545_v33 }
 0x55d   : > { %1367 = vmatmul.mubr.msk.f32.gmra.mrb[6].mxu0 %vm666_vm8, %v546_v34 }
 0x628   : > { %v1362_v35 = vpop.f32.mrb[2].mxu0  ;;  %v1832_v36 = vpop.f32.mrb[4].mxu1 }
 0x629   : > { %994 = vrot.lane.b32.xlu1 %v1362_v35, %s1555_s26  ;;  %v945_v37 = vpop.f32.mrb[3].mxu0  ;;  %v1834_v38 = vpop.f32.mrb[5].mxu1  ;;  %v1057_v54 = vadd.f32 %v1362_v35, %v1035_v49 }
 0x62a   : > { %992 = vrot.lane.b32.xlu0 %v945_v37, %s1555_s26  ;;  %v1056_v56 = vadd.f32 %v1033_v51, %v945_v37 }
 0x62c   : > { %v1365_v39 = vpop.f32.mrb[4].mxu0 }
 0x62d   : > { %1006 = vrot.lane.b32.xlu1 %v1832_v36, %s1555_s26  ;;  %v955_v40 = vpop.f32.mrb[5].mxu0  ;;  %v1059_v57 = vadd.f32 %v1365_v39, %v1039_v53 }
 0x62e   : > { %1004 = vrot.lane.b32.xlu0 %v1834_v38, %s1555_s26  ;;  %v1058_v58 = vadd.f32 %v1037_v55, %v955_v40 }
 0x630   : > { %v1368_v41 = vpop.f32.mrb[6].mxu0 }
 0x631   : > { %998 = vrot.lane.b32.xlu1 %v1365_v39, %s1555_s26  ;;  %v965_v42 = vpop.f32.mrb[7].mxu0  ;;  %v1061_v61 = vadd.f32 %v1368_v41, %v1043_v59 }
 0x632   : > { %996 = vrot.lane.b32.xlu0 %v955_v40, %s1555_s26  ;;  %v1060_v62 = vadd.f32 %v1041_v60, %v965_v42 }
 0x635   : > { %1002 = vrot.lane.b32.xlu1 %v1368_v41, %s1555_s26 }
 0x636   : > { %1000 = vrot.lane.b32.xlu0 %v965_v42, %s1555_s26 }
 0x639   : > { %1046 = vrot.lane.b32.xlu1 %v562_v44, %s1553_s28 }
 0x63a   : > { %1044 = vrot.lane.b32.xlu0 %v561_v47, %s1553_s28 }
 0x63d   : > { %847 = vrot.lane.b32.xlu1 %v749_v50, %s1555_s26 }
 0x63e   : > { %845 = vrot.lane.b32.xlu0 %v748_v52, %s1555_s26 }
 0x641   : > { %1106 = vrot.lane.b32.xlu1 %v1057_v54, %s1553_s28 }
 0x642   : > { %1104 = vrot.lane.b32.xlu0 %v1056_v56, %s1553_s28 }
 0x645   : > { %1110 = vrot.lane.b32.xlu1 %v1059_v57, %s1553_s28 }
 0x646   : > { %1108 = vrot.lane.b32.xlu0 %v1058_v58, %s1553_s28 }
 0x649   : > { %1114 = vrot.lane.b32.xlu1 %v1061_v61, %s1553_s28 }
 0x64a   : > { %1112 = vrot.lane.b32.xlu0 %v1060_v62, %s1553_s28 }
 0x69b   : > { %v995_v63 = vpop.permute.xlu1 %994 }
 0x69c   : > { %v1017_v0 = vsub.f32 %v1362_v35, %v995_v63  ;;  %v993_v1 = vpop.permute.xlu0 %992 }
 0x69d   : > { %v1016_v2 = vsub.f32 %v945_v37, %v993_v1 }
 0x69e   : > { %1074 = vrot.lane.b32.xlu1 %v1017_v0, %s1553_s28 }
 0x69f   : > { %v1007_v3 = vpop.permute.xlu1 %1006  ;;  %1072 = vrot.lane.b32.xlu0 %v1016_v2, %s1553_s28 }
 0x6a0   : > { %v1023_v4 = vsub.f32 %v1832_v36, %v1007_v3  ;;  %v1005_v5 = vpop.permute.xlu0 %1004 }
 0x6a1   : > { %v1022_v6 = vsub.f32 %v1834_v38, %v1005_v5 }
 0x6a2   : > { %1086 = vrot.lane.b32.xlu1 %v1023_v4, %s1553_s28 }
 0x6a3   : > { %v999_v7 = vpop.permute.xlu1 %998  ;;  %1084 = vrot.lane.b32.xlu0 %v1022_v6, %s1553_s28 }
 0x6a4   : > { %v1019_v8 = vsub.f32 %v1365_v39, %v999_v7  ;;  %v997_v9 = vpop.permute.xlu0 %996 }
 0x6a5   : > { %v1018_v10 = vsub.f32 %v955_v40, %v997_v9 }
 0x6a6   : > { %1078 = vrot.lane.b32.xlu1 %v1019_v8, %s1553_s28 }
 0x6a7   : > { %v1003_v11 = vpop.permute.xlu1 %1002  ;;  %1076 = vrot.lane.b32.xlu0 %v1018_v10, %s1553_s28 }
 0x6a8   : > { %v1021_v12 = vsub.f32 %v1368_v41, %v1003_v11  ;;  %v1001_v13 = vpop.permute.xlu0 %1000 }
 0x6a9   : > { %v1020_v14 = vsub.f32 %v965_v42, %v1001_v13 }
 0x6aa   : > { %1082 = vrot.lane.b32.xlu1 %v1021_v12, %s1553_s28 }
 0x6ab   : > { %v1047_v15 = vpop.permute.xlu1 %1046  ;;  %1080 = vrot.lane.b32.xlu0 %v1020_v14, %s1553_s28 }
 0x6ac   : > { %v1063_v16 = vadd.f32 %v1832_v36, %v1047_v15  ;;  %v1045_v17 = vpop.permute.xlu0 %1044 }
 0x6ad   : > { %v1062_v18 = vadd.f32 %v1045_v17, %v1834_v38 }
 0x6ae   : > { %1118 = vrot.lane.b32.xlu1 %v1063_v16, %s1553_s28 }
 0x6af   : > { %1116 = vrot.lane.b32.xlu0 %v1062_v18, %s1553_s28  ;;  %v848_v19 = vpop.permute.xlu1 %847 }
 0x6b0   : > { %v846_v20 = vpop.permute.xlu0 %845  ;;  %v852_v25 = vsub.f32 %v749_v50, %v848_v19 }
 0x6b1   : > { %v851_v26 = vsub.f32 %v748_v52, %v846_v20 }
 0x6b2   : > { %v854_v29 = vmul.f32 0.25, %v852_v25 }
 0x6b3   : > { %v1107_v21 = vpop.permute.xlu1 %1106  ;;  %v853_v30 = vmul.f32 0.25, %v851_v26 }
 0x6b4   : > { %v1105_v22 = vpop.permute.xlu0 %1104 }
 0x6b7   : > { %v1111_v23 = vpop.permute.xlu1 %1110 }
 0x6b8   : > { %v1109_v24 = vpop.permute.xlu0 %1108 }
 0x6bb   : > { %v1115_v27 = vpop.permute.xlu1 %1114 }
 0x6bc   : > { %v1113_v28 = vpop.permute.xlu0 %1112 }
 0x710   : > { %v1075_v31 = vpop.permute.xlu1 %1074 }
 0x711   : > { %v1129_v32 = vsel %vm465_vm6, %v854_v29, %v1075_v31  ;;  %v1073_v33 = vpop.permute.xlu0 %1072 }
 0x712   : > { %v1137_v34 = vsel %vm474_vm7, %v1129_v32, %v1107_v21  ;;  %v1128_v35 = vsel %vm465_vm6, %v853_v30, %v1073_v33 }
 0x713   : > { %1146 = vst.msk [vmem:[%s1644_s22 + $0x8] sm:$0xff] %vm1144_vm9, %v1137_v34  ;;  %v1136_v36 = vsel %vm474_vm7, %v1128_v35, %v1105_v22 }
 0x714   : > { %1145 = vst.msk [vmem:[%s1644_s22] sm:$0xff] %vm1144_vm9, %v1136_v36  ;;  %v1087_v37 = vpop.permute.xlu1 %1086 }
 0x715   : > { %v1085_v38 = vpop.permute.xlu0 %1084  ;;  %v1135_v51 = vsel %vm465_vm6, 0.0, %v1087_v37 }
 0x716   : > { %v1134_v53 = vsel %vm465_vm6, 0.0, %v1085_v38 }
 0x718   : > { %v1079_v39 = vpop.permute.xlu1 %1078 }
 0x719   : > { %v1131_v40 = vsel %vm465_vm6, 0.0, %v1079_v39  ;;  %v1077_v41 = vpop.permute.xlu0 %1076 }
 0x71a   : > { %v1139_v42 = vsel %vm474_vm7, %v1131_v40, %v1111_v23  ;;  %v1130_v43 = vsel %vm465_vm6, 0.0, %v1077_v41 }
 0x71b   : > { %1148 = vst.msk [vmem:[%s1644_s22 + $0x18] sm:$0xff] %vm1144_vm9, %v1139_v42  ;;  %v1138_v44 = vsel %vm474_vm7, %v1130_v43, %v1109_v24 }
 0x71c   : > { %1147 = vst.msk [vmem:[%s1644_s22 + $0x10] sm:$0xff] %vm1144_vm9, %v1138_v44  ;;  %v1083_v45 = vpop.permute.xlu1 %1082 }
 0x71d   : > { %v1133_v46 = vsel %vm465_vm6, 0.0, %v1083_v45  ;;  %v1081_v47 = vpop.permute.xlu0 %1080 }
 0x71e   : > { %v1141_v48 = vsel %vm474_vm7, %v1133_v46, %v1115_v27  ;;  %v1132_v49 = vsel %vm465_vm6, 0.0, %v1081_v47 }
 0x71f   : > { %1150 = vst.msk [vmem:[%s1644_s22 + $0x28] sm:$0xff] %vm1144_vm9, %v1141_v48  ;;  %v1140_v50 = vsel %vm474_vm7, %v1132_v49, %v1113_v28 }
 0x720   : > { %1149 = vst.msk [vmem:[%s1644_s22 + $0x20] sm:$0xff] %vm1144_vm9, %v1140_v50  ;;  %v1119_v52 = vpop.permute.xlu1 %1118 }
 0x721   : > { %v1143_v54 = vsel %vm474_vm7, %v1135_v51, %v1119_v52  ;;  %v1117_v55 = vpop.permute.xlu0 %1116 }
 0x722   : > { %1152 = vst.msk [vmem:[%s1644_s22 + $0x38] sm:$0xff] %vm1144_vm9, %v1143_v54  ;;  %v1142_v56 = vsel %vm474_vm7, %v1134_v53, %v1117_v55 }
 0x723   : > { %1151 = vst.msk [vmem:[%s1644_s22 + $0x30] sm:$0xff] %vm1144_vm9, %v1142_v56 }
 0x724 PF: > { %s13_s18 = sadd.s32 1, %s1545_s18   ;;  %s1929_s12 = smov %s1525_s13 }
 0x725   : > { %p10_p13 = scmp.ge.s32.totalorder %s13_s18, 6   ;;  %s1930_s13 = smov %s1627_s25 }
 0x726   : > { %s1931_s14 = smov %s1537_s16  ;;  %s1932_s15 = smov %s1541_s17 }
 0x727   : > { %s1933_s16 = smov %s1936_s19  ;;  %s1934_s17 = smov %s1940_s20 }
 0x728   :  { %12 = sbr.rel (!%p10_p13) target bundleno = 4 (0x4), region = 113 }

</bundles_post_ra>
